<compile_context>
chip_gen: v5e
topology: v5e:2x2
jax: 0.10.0
libtpu: 0.0.40
codegen_flags: <defaults>
</compile_context>

<pallas_src>
import functools

import jax
import jax.numpy as jnp
from jax.experimental import pallas as pl
from jax.experimental.pallas import tpu as pltpu


def _round_up(x, m):
    return ((x + m - 1) // m) * m


def dynamic_head_kernel(
    x_ref,
    w1_ref, b1_ref, g1_ref, be1_ref,
    w2_ref, b2_ref, g2_ref, be2_ref,
    w3_ref, b3_ref, g3_ref, be3_ref,
    wh_ref, bh_ref,
    out_ref,
    *,
    num_classes,
):
    eps = 1e-5

    def block(x_f32, x_mm, w_ref, b_ref, g_ref, be_ref, apply_relu):
        # Conv1d(k=1) == x @ W (weights stored (din, dout)); bf16 MXU operands,
        # f32 accumulation.  Residual + LayerNorm math stays f32.
        y = jnp.dot(x_mm, w_ref[...], preferred_element_type=jnp.float32)
        y = y + b_ref[...] + x_f32
        # Two-moment LayerNorm (biased variance, like torch): no centered pass.
        mean = jnp.mean(y, axis=-1, keepdims=True)
        m2 = jnp.mean(y * y, axis=-1, keepdims=True)
        var = m2 - mean * mean
        inv = jax.lax.rsqrt(var + eps)
        out = (y - mean) * (inv * g_ref[...]) + be_ref[...]
        if apply_relu:
            out = jnp.maximum(out, 0.0)
        return out

    x_bf = x_ref[...]                      # (TM, D) bf16 straight from HBM
    x32 = x_bf.astype(jnp.float32)

    x32 = block(x32, x_bf, w1_ref, b1_ref, g1_ref, be1_ref, True)
    x32 = block(x32, x32.astype(w2_ref.dtype), w2_ref, b2_ref, g2_ref, be2_ref, True)
    x32 = block(x32, x32.astype(w3_ref.dtype), w3_ref, b3_ref, g3_ref, be3_ref, False)

    # Fused class+bbox head: single lane-dense (TM, C_pad) slab, C_pad % 128 == 0.
    h = (
        jnp.dot(x32.astype(wh_ref.dtype), wh_ref[...],
                preferred_element_type=jnp.float32)
        + bh_ref[...]
    )
    # Apply the bbox sigmoid in-kernel on lanes [C, C+4) (EUP slot is free).
    lane = jax.lax.broadcasted_iota(jnp.int32, h.shape, 1)
    is_box = (lane >= num_classes) & (lane < num_classes + 4)
    out_ref[...] = jnp.where(is_box, jax.nn.sigmoid(h), h)


def dynamic_head_forward(proposals, params, *, tm=1024):
    """proposals: (B, N, D) float32. Returns (class_logits (B,N,C), bbox (B,N,4))."""
    B, N, D = proposals.shape
    M = B * N
    C = params["wc"].shape[1]
    wh = params["wh"]          # (D, C_pad) bf16, zero-padded past C+4
    bh = params["bh"]          # (1, C_pad) f32, zero-padded past C+4
    C_pad = wh.shape[1]

    # Stream activations in bf16 (halves the dominant HBM read traffic).
    x2d = proposals.reshape(M, D).astype(jnp.bfloat16)

    # Size TM from the real M: at least 2 grid steps (v7x megacore + DMA/compute
    # overlap), TM a multiple of 8, capped near `tm`, minimal row padding.
    g = max(2, pl.cdiv(M, tm))
    TM = _round_up(pl.cdiv(M, g), 8)
    M_pad = g * TM
    if M_pad != M:
        x2d = jnp.pad(x2d, ((0, M_pad - M), (0, 0)))
    grid = (g,)

    def row_spec(cols):
        return pl.BlockSpec((TM, cols), lambda i: (i, 0))

    def resident(shape):
        # Same block every grid step -> fetched once, stays resident in VMEM.
        # (pipeline_mode=pl.Buffered(1) would shave a redundant buffer; skipped
        #  to keep to well-exercised APIs — footprint is a few MiB regardless.)
        return pl.BlockSpec(shape, lambda i: (0, 0))

    in_arrays = [
        x2d,
        params["w1"], params["b1"], params["g1"], params["be1"],
        params["w2"], params["b2"], params["g2"], params["be2"],
        params["w3"], params["b3"], params["g3"], params["be3"],
        wh, bh,
    ]
    in_specs = [row_spec(D)] + [resident(a.shape) for a in in_arrays[1:]]

    head = pl.pallas_call(
        functools.partial(dynamic_head_kernel, num_classes=C),
        out_shape=jax.ShapeDtypeStruct((M_pad, C_pad), jnp.float32),
        grid=grid,
        in_specs=in_specs,
        out_specs=row_spec(C_pad),
        compiler_params=pltpu.CompilerParams(
            dimension_semantics=("parallel",),   # shards rows across v7x's 2 TCs
            vmem_limit_bytes=32 << 20,           # few-MiB footprint; safe on all gens
        ),
    )(*in_arrays)

    head = head[:M]
    cls = head[:, :C].reshape(B, N, C)
    box = head[:, C:C + 4].reshape(B, N, 4)     # sigmoid already applied in-kernel
    return cls, box


def init_params(key, hidden_dim, num_classes, matmul_dtype=jnp.bfloat16):
    ks = jax.random.split(key, 10)
    D = hidden_dim
    s = 1.0 / jnp.sqrt(D)

    def lin(k, din, dout):
        # stored (din, dout) so the kernel does x @ W (== torch x @ W.T)
        return jax.random.uniform(k, (din, dout), jnp.float32, -s, s).astype(matmul_dtype)

    def bias(k, dout):
        return jax.random.uniform(k, (1, dout), jnp.float32, -s, s)

    params = {
        "w1": lin(ks[0], D, D), "b1": bias(ks[1], D),
        "w2": lin(ks[2], D, D), "b2": bias(ks[3], D),
        "w3": lin(ks[4], D, D), "b3": bias(ks[5], D),
        # LayerNorm default init: gamma=1, beta=0 (kept f32)
        "g1": jnp.ones((1, D), jnp.float32), "be1": jnp.zeros((1, D), jnp.float32),
        "g2": jnp.ones((1, D), jnp.float32), "be2": jnp.zeros((1, D), jnp.float32),
        "g3": jnp.ones((1, D), jnp.float32), "be3": jnp.zeros((1, D), jnp.float32),
        "wc": lin(ks[6], D, num_classes), "bc": bias(ks[7], num_classes),
        "wb": lin(ks[8], D, 4), "bb": bias(ks[9], 4),
    }

    # Fused, lane-padded head: (D, C+4) -> (D, Cpad), Cpad multiple of 128.
    C_pad = _round_up(num_classes + 4, 128)
    wh = jnp.concatenate([params["wc"], params["wb"]], axis=1)
    wh = jnp.pad(wh, ((0, 0), (0, C_pad - (num_classes + 4)))).astype(matmul_dtype)
    bh = jnp.concatenate([params["bc"], params["bb"]], axis=1)
    bh = jnp.pad(bh, ((0, 0), (0, C_pad - (num_classes + 4)))).astype(jnp.float32)
    params["wh"] = wh
    params["bh"] = bh
    return params


def reference_forward(proposals, params):
    """Pure-JAX reference mirroring the PyTorch forward (same precision choices
    as the kernel: bf16 activation streaming + bf16 MXU operands, f32 elsewhere)."""
    eps = 1e-5
    x = proposals.astype(jnp.bfloat16).astype(jnp.float32)  # (B, N, D)

    def mm(x, w):
        return jnp.dot(x.astype(w.dtype), w, preferred_element_type=jnp.float32)

    def ln(y, g, b):
        m = jnp.mean(y, axis=-1, keepdims=True)
        v = jnp.mean((y - m) ** 2, axis=-1, keepdims=True)
        return (y - m) * jax.lax.rsqrt(v + eps) * g + b

    def block(x, w, b, g, be, relu):
        y = mm(x, w) + b + x
        y = ln(y, g, be)
        return jnp.maximum(y, 0.0) if relu else y

    x = block(x, params["w1"], params["b1"], params["g1"], params["be1"], True)
    x = block(x, params["w2"], params["b2"], params["g2"], params["be2"], True)
    x = block(x, params["w3"], params["b3"], params["g3"], params["be3"], False)
    cls = mm(x, params["wc"]) + params["bc"]
    box = jax.nn.sigmoid(mm(x, params["wb"]) + params["bb"])
    return cls, box


if __name__ == "__main__":
    B, N, D, C = 2, 8, 32, 91  # small test shapes; torch defaults were D=256, C=91

    key = jax.random.PRNGKey(0)
    k_prop, k_feat, k_par = jax.random.split(key, 3)
    proposals = jax.random.normal(k_prop, (B, N, D), jnp.float32)
    features = jax.random.normal(k_feat, (B, D, 16, 16), jnp.float32)  # unused by forward
    params = init_params(k_par, D, C)

    cls_logits, bbox_pred = dynamic_head_forward(proposals, params)
    cls_logits = jax.block_until_ready(cls_logits)
    bbox_pred = jax.block_until_ready(bbox_pred)

    cls_ref, box_ref = reference_forward(proposals, params)
    assert cls_logits.shape == (B, N, C) and bbox_pred.shape == (B, N, 4)
    assert jnp.allclose(cls_logits, cls_ref, atol=2e-3, rtol=2e-3)
    assert jnp.allclose(bbox_pred, box_ref, atol=2e-3, rtol=2e-3)

    print("KERNEL_OK")
</pallas_src>

<mosaic_0001>
module attributes {stable_mosaic.version = 11 : i64} {
  func.func @dynamic_head_kernel(%arg0: i32, %arg1: memref<8x32xbf16, #tpu.memory_space<vmem>>, %arg2: memref<32x32xbf16, #tpu.memory_space<vmem>>, %arg3: memref<1x32xf32, #tpu.memory_space<vmem>>, %arg4: memref<1x32xf32, #tpu.memory_space<vmem>>, %arg5: memref<1x32xf32, #tpu.memory_space<vmem>>, %arg6: memref<32x32xbf16, #tpu.memory_space<vmem>>, %arg7: memref<1x32xf32, #tpu.memory_space<vmem>>, %arg8: memref<1x32xf32, #tpu.memory_space<vmem>>, %arg9: memref<1x32xf32, #tpu.memory_space<vmem>>, %arg10: memref<32x32xbf16, #tpu.memory_space<vmem>>, %arg11: memref<1x32xf32, #tpu.memory_space<vmem>>, %arg12: memref<1x32xf32, #tpu.memory_space<vmem>>, %arg13: memref<1x32xf32, #tpu.memory_space<vmem>>, %arg14: memref<32x128xbf16, #tpu.memory_space<vmem>>, %arg15: memref<1x128xf32, #tpu.memory_space<vmem>>, %arg16: memref<8x128xf32, #tpu.memory_space<vmem>>) attributes {dimension_semantics = [#tpu.dimension_semantics<parallel>], iteration_bounds = array<i64: 2>, scalar_prefetch = 0 : i64, scratch_operands = 0 : i64, tpu.core_type = #tpu.core_type<tc>, window_params = [{transform_indices = @transform_0, window_bounds = array<i64: 8, 32>}, {pipeline_mode = #tpu.pipeline_mode<synchronous>, transform_indices = @transform_1, window_bounds = array<i64: 32, 32>}, {pipeline_mode = #tpu.pipeline_mode<synchronous>, transform_indices = @transform_2, window_bounds = array<i64: 1, 32>}, {pipeline_mode = #tpu.pipeline_mode<synchronous>, transform_indices = @transform_3, window_bounds = array<i64: 1, 32>}, {pipeline_mode = #tpu.pipeline_mode<synchronous>, transform_indices = @transform_4, window_bounds = array<i64: 1, 32>}, {pipeline_mode = #tpu.pipeline_mode<synchronous>, transform_indices = @transform_5, window_bounds = array<i64: 32, 32>}, {pipeline_mode = #tpu.pipeline_mode<synchronous>, transform_indices = @transform_6, window_bounds = array<i64: 1, 32>}, {pipeline_mode = #tpu.pipeline_mode<synchronous>, transform_indices = @transform_7, window_bounds = array<i64: 1, 32>}, {pipeline_mode = #tpu.pipeline_mode<synchronous>, transform_indices = @transform_8, window_bounds = array<i64: 1, 32>}, {pipeline_mode = #tpu.pipeline_mode<synchronous>, transform_indices = @transform_9, window_bounds = array<i64: 32, 32>}, {pipeline_mode = #tpu.pipeline_mode<synchronous>, transform_indices = @transform_10, window_bounds = array<i64: 1, 32>}, {pipeline_mode = #tpu.pipeline_mode<synchronous>, transform_indices = @transform_11, window_bounds = array<i64: 1, 32>}, {pipeline_mode = #tpu.pipeline_mode<synchronous>, transform_indices = @transform_12, window_bounds = array<i64: 1, 32>}, {pipeline_mode = #tpu.pipeline_mode<synchronous>, transform_indices = @transform_13, window_bounds = array<i64: 32, 128>}, {pipeline_mode = #tpu.pipeline_mode<synchronous>, transform_indices = @transform_14, window_bounds = array<i64: 1, 128>}, {transform_indices = @transform_15, window_bounds = array<i64: 8, 128>}]} {
    %c0 = arith.constant 0 : index
    %c0_0 = arith.constant 0 : index
    %0 = vector.load %arg1[%c0, %c0_0] : memref<8x32xbf16, #tpu.memory_space<vmem>>, vector<8x32xbf16>
    %1 = arith.extf %0 : vector<8x32xbf16> to vector<8x32xf32>
    %c0_1 = arith.constant 0 : index
    %c0_2 = arith.constant 0 : index
    %2 = vector.load %arg2[%c0_1, %c0_2] : memref<32x32xbf16, #tpu.memory_space<vmem>>, vector<32x32xbf16>
    %cst = arith.constant dense<0.000000e+00> : vector<8x32xf32>
    %3 = tpu.matmul %0, %2, %cst {dimension_numbers = #tpu.dot_dimension_numbers<[1], [0], [0], [1], [0, 0, 1, 1], [], []>} : vector<8x32xbf16>, vector<32x32xbf16>, vector<8x32xf32> -> vector<8x32xf32>
    %c0_3 = arith.constant 0 : index
    %c0_4 = arith.constant 0 : index
    %4 = vector.load %arg3[%c0_3, %c0_4] : memref<1x32xf32, #tpu.memory_space<vmem>>, vector<1x32xf32>
    %5 = vector.broadcast %4 : vector<1x32xf32> to vector<8x32xf32>
    %6 = arith.addf %3, %5 : vector<8x32xf32>
    %7 = arith.addf %6, %1 : vector<8x32xf32>
    %cst_5 = arith.constant dense<0.000000e+00> : vector<8xf32>
    %8 = vector.multi_reduction <add>, %7, %cst_5 [1] : vector<8x32xf32> to vector<8xf32>
    %9 = vector.shape_cast %8 : vector<8xf32> to vector<8x1xf32>
    %cst_6 = arith.constant 3.200000e+01 : f32
    %10 = vector.broadcast %cst_6 : f32 to vector<8x1xf32>
    %11 = arith.divf %9, %10 : vector<8x1xf32>
    %12 = arith.mulf %7, %7 : vector<8x32xf32>
    %cst_7 = arith.constant dense<0.000000e+00> : vector<8xf32>
    %13 = vector.multi_reduction <add>, %12, %cst_7 [1] : vector<8x32xf32> to vector<8xf32>
    %14 = vector.shape_cast %13 : vector<8xf32> to vector<8x1xf32>
    %cst_8 = arith.constant 3.200000e+01 : f32
    %15 = vector.broadcast %cst_8 : f32 to vector<8x1xf32>
    %16 = arith.divf %14, %15 : vector<8x1xf32>
    %17 = arith.mulf %11, %11 : vector<8x1xf32>
    %18 = arith.subf %16, %17 : vector<8x1xf32>
    %cst_9 = arith.constant 9.99999974E-6 : f32
    %19 = vector.broadcast %cst_9 : f32 to vector<8x1xf32>
    %20 = arith.addf %18, %19 : vector<8x1xf32>
    %21 = math.rsqrt %20 : vector<8x1xf32>
    %22 = vector.broadcast %11 : vector<8x1xf32> to vector<8x32xf32>
    %23 = arith.subf %7, %22 : vector<8x32xf32>
    %c0_10 = arith.constant 0 : index
    %c0_11 = arith.constant 0 : index
    %24 = vector.load %arg4[%c0_10, %c0_11] : memref<1x32xf32, #tpu.memory_space<vmem>>, vector<1x32xf32>
    %25 = vector.broadcast %21 : vector<8x1xf32> to vector<8x32xf32>
    %26 = vector.broadcast %24 : vector<1x32xf32> to vector<8x32xf32>
    %27 = arith.mulf %25, %26 : vector<8x32xf32>
    %28 = arith.mulf %23, %27 : vector<8x32xf32>
    %c0_12 = arith.constant 0 : index
    %c0_13 = arith.constant 0 : index
    %29 = vector.load %arg5[%c0_12, %c0_13] : memref<1x32xf32, #tpu.memory_space<vmem>>, vector<1x32xf32>
    %30 = vector.broadcast %29 : vector<1x32xf32> to vector<8x32xf32>
    %31 = arith.addf %28, %30 : vector<8x32xf32>
    %cst_14 = arith.constant 0.000000e+00 : f32
    %32 = vector.broadcast %cst_14 : f32 to vector<8x32xf32>
    %33 = arith.maximumf %31, %32 : vector<8x32xf32>
    %34 = arith.truncf %33 : vector<8x32xf32> to vector<8x32xbf16>
    %c0_15 = arith.constant 0 : index
    %c0_16 = arith.constant 0 : index
    %35 = vector.load %arg6[%c0_15, %c0_16] : memref<32x32xbf16, #tpu.memory_space<vmem>>, vector<32x32xbf16>
    %cst_17 = arith.constant dense<0.000000e+00> : vector<8x32xf32>
    %36 = tpu.matmul %34, %35, %cst_17 {dimension_numbers = #tpu.dot_dimension_numbers<[1], [0], [0], [1], [0, 0, 1, 1], [], []>} : vector<8x32xbf16>, vector<32x32xbf16>, vector<8x32xf32> -> vector<8x32xf32>
    %c0_18 = arith.constant 0 : index
    %c0_19 = arith.constant 0 : index
    %37 = vector.load %arg7[%c0_18, %c0_19] : memref<1x32xf32, #tpu.memory_space<vmem>>, vector<1x32xf32>
    %38 = vector.broadcast %37 : vector<1x32xf32> to vector<8x32xf32>
    %39 = arith.addf %36, %38 : vector<8x32xf32>
    %40 = arith.addf %39, %33 : vector<8x32xf32>
    %cst_20 = arith.constant dense<0.000000e+00> : vector<8xf32>
    %41 = vector.multi_reduction <add>, %40, %cst_20 [1] : vector<8x32xf32> to vector<8xf32>
    %42 = vector.shape_cast %41 : vector<8xf32> to vector<8x1xf32>
    %cst_21 = arith.constant 3.200000e+01 : f32
    %43 = vector.broadcast %cst_21 : f32 to vector<8x1xf32>
    %44 = arith.divf %42, %43 : vector<8x1xf32>
    %45 = arith.mulf %40, %40 : vector<8x32xf32>
    %cst_22 = arith.constant dense<0.000000e+00> : vector<8xf32>
    %46 = vector.multi_reduction <add>, %45, %cst_22 [1] : vector<8x32xf32> to vector<8xf32>
    %47 = vector.shape_cast %46 : vector<8xf32> to vector<8x1xf32>
    %cst_23 = arith.constant 3.200000e+01 : f32
    %48 = vector.broadcast %cst_23 : f32 to vector<8x1xf32>
    %49 = arith.divf %47, %48 : vector<8x1xf32>
    %50 = arith.mulf %44, %44 : vector<8x1xf32>
    %51 = arith.subf %49, %50 : vector<8x1xf32>
    %cst_24 = arith.constant 9.99999974E-6 : f32
    %52 = vector.broadcast %cst_24 : f32 to vector<8x1xf32>
    %53 = arith.addf %51, %52 : vector<8x1xf32>
    %54 = math.rsqrt %53 : vector<8x1xf32>
    %55 = vector.broadcast %44 : vector<8x1xf32> to vector<8x32xf32>
    %56 = arith.subf %40, %55 : vector<8x32xf32>
    %c0_25 = arith.constant 0 : index
    %c0_26 = arith.constant 0 : index
    %57 = vector.load %arg8[%c0_25, %c0_26] : memref<1x32xf32, #tpu.memory_space<vmem>>, vector<1x32xf32>
    %58 = vector.broadcast %54 : vector<8x1xf32> to vector<8x32xf32>
    %59 = vector.broadcast %57 : vector<1x32xf32> to vector<8x32xf32>
    %60 = arith.mulf %58, %59 : vector<8x32xf32>
    %61 = arith.mulf %56, %60 : vector<8x32xf32>
    %c0_27 = arith.constant 0 : index
    %c0_28 = arith.constant 0 : index
    %62 = vector.load %arg9[%c0_27, %c0_28] : memref<1x32xf32, #tpu.memory_space<vmem>>, vector<1x32xf32>
    %63 = vector.broadcast %62 : vector<1x32xf32> to vector<8x32xf32>
    %64 = arith.addf %61, %63 : vector<8x32xf32>
    %cst_29 = arith.constant 0.000000e+00 : f32
    %65 = vector.broadcast %cst_29 : f32 to vector<8x32xf32>
    %66 = arith.maximumf %64, %65 : vector<8x32xf32>
    %67 = arith.truncf %66 : vector<8x32xf32> to vector<8x32xbf16>
    %c0_30 = arith.constant 0 : index
    %c0_31 = arith.constant 0 : index
    %68 = vector.load %arg10[%c0_30, %c0_31] : memref<32x32xbf16, #tpu.memory_space<vmem>>, vector<32x32xbf16>
    %cst_32 = arith.constant dense<0.000000e+00> : vector<8x32xf32>
    %69 = tpu.matmul %67, %68, %cst_32 {dimension_numbers = #tpu.dot_dimension_numbers<[1], [0], [0], [1], [0, 0, 1, 1], [], []>} : vector<8x32xbf16>, vector<32x32xbf16>, vector<8x32xf32> -> vector<8x32xf32>
    %c0_33 = arith.constant 0 : index
    %c0_34 = arith.constant 0 : index
    %70 = vector.load %arg11[%c0_33, %c0_34] : memref<1x32xf32, #tpu.memory_space<vmem>>, vector<1x32xf32>
    %71 = vector.broadcast %70 : vector<1x32xf32> to vector<8x32xf32>
    %72 = arith.addf %69, %71 : vector<8x32xf32>
    %73 = arith.addf %72, %66 : vector<8x32xf32>
    %cst_35 = arith.constant dense<0.000000e+00> : vector<8xf32>
    %74 = vector.multi_reduction <add>, %73, %cst_35 [1] : vector<8x32xf32> to vector<8xf32>
    %75 = vector.shape_cast %74 : vector<8xf32> to vector<8x1xf32>
    %cst_36 = arith.constant 3.200000e+01 : f32
    %76 = vector.broadcast %cst_36 : f32 to vector<8x1xf32>
    %77 = arith.divf %75, %76 : vector<8x1xf32>
    %78 = arith.mulf %73, %73 : vector<8x32xf32>
    %cst_37 = arith.constant dense<0.000000e+00> : vector<8xf32>
    %79 = vector.multi_reduction <add>, %78, %cst_37 [1] : vector<8x32xf32> to vector<8xf32>
    %80 = vector.shape_cast %79 : vector<8xf32> to vector<8x1xf32>
    %cst_38 = arith.constant 3.200000e+01 : f32
    %81 = vector.broadcast %cst_38 : f32 to vector<8x1xf32>
    %82 = arith.divf %80, %81 : vector<8x1xf32>
    %83 = arith.mulf %77, %77 : vector<8x1xf32>
    %84 = arith.subf %82, %83 : vector<8x1xf32>
    %cst_39 = arith.constant 9.99999974E-6 : f32
    %85 = vector.broadcast %cst_39 : f32 to vector<8x1xf32>
    %86 = arith.addf %84, %85 : vector<8x1xf32>
    %87 = math.rsqrt %86 : vector<8x1xf32>
    %88 = vector.broadcast %77 : vector<8x1xf32> to vector<8x32xf32>
    %89 = arith.subf %73, %88 : vector<8x32xf32>
    %c0_40 = arith.constant 0 : index
    %c0_41 = arith.constant 0 : index
    %90 = vector.load %arg12[%c0_40, %c0_41] : memref<1x32xf32, #tpu.memory_space<vmem>>, vector<1x32xf32>
    %91 = vector.broadcast %87 : vector<8x1xf32> to vector<8x32xf32>
    %92 = vector.broadcast %90 : vector<1x32xf32> to vector<8x32xf32>
    %93 = arith.mulf %91, %92 : vector<8x32xf32>
    %94 = arith.mulf %89, %93 : vector<8x32xf32>
    %c0_42 = arith.constant 0 : index
    %c0_43 = arith.constant 0 : index
    %95 = vector.load %arg13[%c0_42, %c0_43] : memref<1x32xf32, #tpu.memory_space<vmem>>, vector<1x32xf32>
    %96 = vector.broadcast %95 : vector<1x32xf32> to vector<8x32xf32>
    %97 = arith.addf %94, %96 : vector<8x32xf32>
    %98 = arith.truncf %97 : vector<8x32xf32> to vector<8x32xbf16>
    %c0_44 = arith.constant 0 : index
    %c0_45 = arith.constant 0 : index
    %99 = vector.load %arg14[%c0_44, %c0_45] : memref<32x128xbf16, #tpu.memory_space<vmem>>, vector<32x128xbf16>
    %cst_46 = arith.constant dense<0.000000e+00> : vector<8x128xf32>
    %100 = tpu.matmul %98, %99, %cst_46 {dimension_numbers = #tpu.dot_dimension_numbers<[1], [0], [0], [1], [0, 0, 1, 1], [], []>} : vector<8x32xbf16>, vector<32x128xbf16>, vector<8x128xf32> -> vector<8x128xf32>
    %c0_47 = arith.constant 0 : index
    %c0_48 = arith.constant 0 : index
    %101 = vector.load %arg15[%c0_47, %c0_48] : memref<1x128xf32, #tpu.memory_space<vmem>>, vector<1x128xf32>
    %102 = vector.broadcast %101 : vector<1x128xf32> to vector<8x128xf32>
    %103 = arith.addf %100, %102 : vector<8x128xf32>
    %104 = tpu.iota {dimensions = array<i32: 1>} : vector<8x128xi32>
    %c91_i32 = arith.constant 91 : i32
    %105 = vector.broadcast %c91_i32 : i32 to vector<8x128xi32>
    %106 = arith.cmpi sge, %104, %105 : vector<8x128xi32>
    %c95_i32 = arith.constant 95 : i32
    %107 = vector.broadcast %c95_i32 : i32 to vector<8x128xi32>
    %108 = arith.cmpi slt, %104, %107 : vector<8x128xi32>
    %109 = arith.andi %106, %108 : vector<8x128xi1>
    %110 = arith.negf %103 : vector<8x128xf32>
    %111 = math.exp %110 : vector<8x128xf32>
    %cst_49 = arith.constant 1.000000e+00 : f32
    %112 = vector.broadcast %cst_49 : f32 to vector<8x128xf32>
    %113 = arith.addf %112, %111 : vector<8x128xf32>
    %114 = arith.divf %112, %113 : vector<8x128xf32>
    %115 = arith.select %109, %114, %103 : vector<8x128xi1>, vector<8x128xf32>
    %c0_50 = arith.constant 0 : index
    %c0_51 = arith.constant 0 : index
    %116 = vector.load %arg16[%c0_50, %c0_51] : memref<8x128xf32, #tpu.memory_space<vmem>>, vector<8x128xf32>
    tpu.vector_store %arg16[%c0_50, %c0_51], %115 {strides = array<i32>} : memref<8x128xf32, #tpu.memory_space<vmem>>, vector<8x128xf32>,
    return
  }
  func.func @transform_0(%arg0: i32) -> (i32, i32) {
    %c0_i32 = arith.constant 0 : i32
    %c0_i32_0 = arith.constant 0 : i32
    return %arg0, %c0_i32 : i32, i32
  }
  func.func @transform_1(%arg0: i32) -> (i32, i32) {
    %c0_i32 = arith.constant 0 : i32
    %c0_i32_0 = arith.constant 0 : i32
    %c0_i32_1 = arith.constant 0 : i32
    return %c0_i32, %c0_i32_0 : i32, i32
  }
  func.func @transform_2(%arg0: i32) -> (i32, i32) {
    %c0_i32 = arith.constant 0 : i32
    %c0_i32_0 = arith.constant 0 : i32
    %c0_i32_1 = arith.constant 0 : i32
    return %c0_i32, %c0_i32_0 : i32, i32
  }
  func.func @transform_3(%arg0: i32) -> (i32, i32) {
    %c0_i32 = arith.constant 0 : i32
    %c0_i32_0 = arith.constant 0 : i32
    %c0_i32_1 = arith.constant 0 : i32
    return %c0_i32, %c0_i32_0 : i32, i32
  }
  func.func @transform_4(%arg0: i32) -> (i32, i32) {
    %c0_i32 = arith.constant 0 : i32
    %c0_i32_0 = arith.constant 0 : i32
    %c0_i32_1 = arith.constant 0 : i32
    return %c0_i32, %c0_i32_0 : i32, i32
  }
  func.func @transform_5(%arg0: i32) -> (i32, i32) {
    %c0_i32 = arith.constant 0 : i32
    %c0_i32_0 = arith.constant 0 : i32
    %c0_i32_1 = arith.constant 0 : i32
    return %c0_i32, %c0_i32_0 : i32, i32
  }
  func.func @transform_6(%arg0: i32) -> (i32, i32) {
    %c0_i32 = arith.constant 0 : i32
    %c0_i32_0 = arith.constant 0 : i32
    %c0_i32_1 = arith.constant 0 : i32
    return %c0_i32, %c0_i32_0 : i32, i32
  }
  func.func @transform_7(%arg0: i32) -> (i32, i32) {
    %c0_i32 = arith.constant 0 : i32
    %c0_i32_0 = arith.constant 0 : i32
    %c0_i32_1 = arith.constant 0 : i32
    return %c0_i32, %c0_i32_0 : i32, i32
  }
  func.func @transform_8(%arg0: i32) -> (i32, i32) {
    %c0_i32 = arith.constant 0 : i32
    %c0_i32_0 = arith.constant 0 : i32
    %c0_i32_1 = arith.constant 0 : i32
    return %c0_i32, %c0_i32_0 : i32, i32
  }
  func.func @transform_9(%arg0: i32) -> (i32, i32) {
    %c0_i32 = arith.constant 0 : i32
    %c0_i32_0 = arith.constant 0 : i32
    %c0_i32_1 = arith.constant 0 : i32
    return %c0_i32, %c0_i32_0 : i32, i32
  }
  func.func @transform_10(%arg0: i32) -> (i32, i32) {
    %c0_i32 = arith.constant 0 : i32
    %c0_i32_0 = arith.constant 0 : i32
    %c0_i32_1 = arith.constant 0 : i32
    return %c0_i32, %c0_i32_0 : i32, i32
  }
  func.func @transform_11(%arg0: i32) -> (i32, i32) {
    %c0_i32 = arith.constant 0 : i32
    %c0_i32_0 = arith.constant 0 : i32
    %c0_i32_1 = arith.constant 0 : i32
    return %c0_i32, %c0_i32_0 : i32, i32
  }
  func.func @transform_12(%arg0: i32) -> (i32, i32) {
    %c0_i32 = arith.constant 0 : i32
    %c0_i32_0 = arith.constant 0 : i32
    %c0_i32_1 = arith.constant 0 : i32
    return %c0_i32, %c0_i32_0 : i32, i32
  }
  func.func @transform_13(%arg0: i32) -> (i32, i32) {
    %c0_i32 = arith.constant 0 : i32
    %c0_i32_0 = arith.constant 0 : i32
    %c0_i32_1 = arith.constant 0 : i32
    return %c0_i32, %c0_i32_0 : i32, i32
  }
  func.func @transform_14(%arg0: i32) -> (i32, i32) {
    %c0_i32 = arith.constant 0 : i32
    %c0_i32_0 = arith.constant 0 : i32
    %c0_i32_1 = arith.constant 0 : i32
    return %c0_i32, %c0_i32_0 : i32, i32
  }
  func.func @transform_15(%arg0: i32) -> (i32, i32) {
    %c0_i32 = arith.constant 0 : i32
    %c0_i32_0 = arith.constant 0 : i32
    return %arg0, %c0_i32 : i32, i32
  }
}

</mosaic_0001>

<bundles_post_ra>
// kernel: tpu_custom_call.1
= control target key start
LH: loop header
LB: loop body
LE: loop exit
PB: predicated region body
PF: predicated region fallthrough
CT: control target
= control target key end

     0   :  { %s1699_s0 = inlined_call_operand.hbm [shape: bf16[16,32], index: 0, kind: input, shape index: {}]   ;;  %s1700_s1 = inlined_call_operand.hbm [shape: bf16[32,32], index: 1, kind: input, shape index: {}]   ;;  %s1701_s2 = inlined_call_operand.vmem [shape: f32[1,32], index: 2, kind: input, shape index: {}]   ;;  %s1702_s3 = inlined_call_operand.vmem [shape: f32[1,32], index: 3, kind: input, shape index: {}]   ;;  %s1703_s4 = inlined_call_operand.vmem [shape: f32[1,32], index: 4, kind: input, shape index: {}]   ;;  %s1704_s5 = inlined_call_operand.hbm [shape: bf16[32,32], index: 5, kind: input, shape index: {}]   ;;  %s1705_s6 = inlined_call_operand.vmem [shape: f32[1,32], index: 6, kind: input, shape index: {}]   ;;  %s1706_s7 = inlined_call_operand.vmem [shape: f32[1,32], index: 7, kind: input, shape index: {}]   ;;  %s1707_s8 = inlined_call_operand.vmem [shape: f32[1,32], index: 8, kind: input, shape index: {}]   ;;  %s1708_s9 = inlined_call_operand.hbm [shape: bf16[32,32], index: 9, kind: input, shape index: {}]   ;;  %s1709_s10 = inlined_call_operand.vmem [shape: f32[1,32], index: 10, kind: input, shape index: {}]   ;;  %s1710_s11 = inlined_call_operand.vmem [shape: f32[1,32], index: 11, kind: input, shape index: {}]   ;;  %s1711_s12 = inlined_call_operand.vmem [shape: f32[1,32], index: 12, kind: input, shape index: {}]   ;;  %s1712_s13 = inlined_call_operand.hbm [shape: bf16[32,128], index: 13, kind: input, shape index: {}]   ;;  %s1713_s14 = inlined_call_operand.vmem [shape: f32[1,128], index: 14, kind: input, shape index: {}]   ;;  %s1714_s15 = inlined_call_operand.hbm [shape: f32[16,128], index: 15, kind: output, shape index: {}]  }
   0x1   :  { %1720 = sst [smem:[#allocation20_spill]] %s1700_s1 }
   0x2   :  { %1721 = sst [smem:[#allocation21_spill]] %s1704_s5 }
   0x3   :  { %1722 = sst [smem:[#allocation22_spill]] %s1708_s9 }
   0x4   :  { %1723 = sst [smem:[#allocation23_spill]] %s1712_s13 }
   0x5   :  { %1724 = sst [smem:[#allocation24_spill]] %s1713_s14 }
   0x6   :  { %1725 = sst [smem:[#allocation25_spill]] %s1714_s15 }
   0x7   :  { %20 = vsyncpa [#allocation3], 0 }
   0x8   :  { %22 = vsyncpa [#allocation3 + $0x1], 0 }
   0x9   :  { %23 = vsyncpa [#allocation6], 0 }
   0xa   :  { %24 = vsyncpa [#allocation9], 0 }
   0xb   :  { %25 = vsyncpa [#allocation4], 0 }
   0xc   :  { %27 = vsyncpa [#allocation4 + $0x1], 0  ;;  %s1483_s18 = smov 0   ;;  %s1485_s19 = smov 0  }
   0xd   :  { %s1487_s20 = smov 0   ;;  %s1489_s21 = smov 0  }
   0xe LB: > { %1726 = sst [smem:[#allocation16_spill]] %s1390_s20  ;;  %s1507_s25 = sadd.s32 4294967295, %s1394_s21   ;;  %s1394_s21 = sphi %s1489_s21, %s1745_s21   ;;  %s1390_s20 = sphi %s1487_s20, %s1747_s20   ;;  %s1386_s19 = sphi %s1485_s19, %s1749_s19   ;;  %s1382_s18 = sphi %s1483_s18, %s1748_s18  }
   0xf   : > { %s1727_s1 = sld [smem:[#allocation20_spill]]  ;;  %p994_p0 = scmp.ge.s32.totalorder %s1394_s21, 1 }
  0x10   : > { %p54_p1 = scmp.eq.s32.totalorder %s1507_s25, 0  ;;  %p384_p2 = scmp.lt.s32.totalorder %s1394_s21, 3 }
  0x11   : > { %s1396_s27 = smov [#allocation5]   ;;  %s1729_s9 = sld [smem:[#allocation22_spill]] }
  0x12   : > { %p1512_p3 = pnand %p994_p0, %p384_p2  ;;  %s397_s28 = sshll.u32 %s1396_s27, 4  ;;  %s398_s28 = int_to_ptr.vmem [resolvable:$true] %s397_s28 }
  0x13   : > { %s1731_s5 = sld [smem:[#allocation21_spill]]  ;;  %s1398_s14 = smov 64  }
  0x14   : > { %p1078_p4 = pneg %p1512_p3  ;;  %s1399_s29 = smov 4  }
  0x15   : > { %s395_s24 = sshll.u32 %s1727_s1, 4  ;;  %s1397_s1 = smov [#allocation8]   ;;  %s396_s24 = int_to_ptr.hbm [resolvable:$true] %s395_s24 }
  0x16   : > { %p1524_p6 = pnand %p1078_p4, %p54_p1  ;;  %s443_s15 = sshll.u32 %s1397_s1, 4  ;;  %s444_s15 = int_to_ptr.vmem [resolvable:$true] %s443_s15 }
  0x17   : > { %s441_s16 = sshll.u32 %s1729_s9, 4  ;;  %s1732_s13 = sld [smem:[#allocation23_spill]]  ;;  %s442_s16 = int_to_ptr.hbm [resolvable:$true] %s441_s16 }
  0x18   : > { %1081 = dma.hbm_to_vmem [thread:$0]  (!%p1524_p6), %s396_s24, 256, %s398_s28, [#allocation6], %s1398_s14, %s1398_s14, %s1399_s29  }
  0x19   : > { %s418_s27 = sshll.u32 %s1731_s5, 4  ;;  %s1400_s1 = smov [#allocation7]   ;;  %s419_s27 = int_to_ptr.hbm [resolvable:$true] %s418_s27 }
  0x1a   : > { %1087 = dma.hbm_to_vmem [thread:$0]  (!%p1524_p6), %s442_s16, 256, %s444_s15, [#allocation9], %s1398_s14, %s1398_s14, %s1399_s29  }
  0x1b   : > { %s420_s23 = sshll.u32 %s1400_s1, 4  ;;  %s1401_s24 = smov [#allocation10]   ;;  %s421_s23 = int_to_ptr.vmem [resolvable:$true] %s420_s23 }
  0x1c   : > { %1084 = dma.hbm_to_vmem [thread:$0]  (!%p1524_p6), %s419_s27, 256, %s421_s23, [#allocation6], %s1398_s14, %s1398_s14, %s1399_s29  }
  0x1d   : > { %s464_s22 = sshll.u32 %s1732_s13, 4  ;;  %s466_s15 = sshll.u32 %s1401_s24, 4  ;;  %s465_s22 = int_to_ptr.hbm [resolvable:$true] %s464_s22  ;;  %s467_s15 = int_to_ptr.vmem [resolvable:$true] %s466_s15 }
  0x1e   : > { %1090 = dma.hbm_to_vmem [thread:$0]  (!%p1524_p6), %s465_s22, 256, %s467_s15, [#allocation9], %s1398_s14, %s1398_s14, %s1399_s29  }
  0x1f   : > { %s993_s9 = sadd.s32 4294967294, %s1394_s21   ;;  %s1544_s28 = sadd.s32 1, %s1394_s21  }
  0x20   : > { %1733 = sst [smem:[#allocation17_spill]] %s1544_s28  ;;  %s37_s16 = ssub.s32 %s1394_s21, %s1544_s28 }
  0x21   : > { %s40_s30 = sadd.s32 1, %s1390_s20  ;;  %p38_p7 = scmp.eq.s32.totalorder %s37_s16, 0 }
  0x22   : > { %p47_p8 = scmp.ne.s32.totalorder %s1390_s20, %s1386_s19  ;;  %p48_p9 = scmp.eq.s32.totalorder %s1394_s21, 0 }
  0x23   : > { %p53_p10 = scmp.ne.s32.totalorder %s1386_s19, %s1382_s18  ;;  %p371_p13 = scmp.eq.s32.totalorder %s1507_s25, 1 }
  0x24   : > { %s1555_s27 = scalar_select %p38_p7, %s1390_s20, %s40_s30  }
  0x25   : > { %p1557_p11 = por %p48_p9, %p47_p8  ;;  %p1563_p12 = por %p54_p1, %p53_p10 }
  0x26   : > { %1734 = sst [smem:[#allocation18_spill]] %s1555_s27  ;;  %p377_p0 = scmp.eq.s32.totalorder %s993_s9, 1 }
  0x27   : > { %p1103_p2 = scmp.lt.s32.totalorder %s1394_s21, 2  ;;  %s483_s17 = sand.u32 1, %s1390_s20  }
  0x28   : > { %p1570_p4 = por %p371_p13, %p47_p8  ;;  %p1574_p6 = por %p377_p0, %p53_p10 }
  0x29   : > { %s1000_s23 = sshll.u32 %s483_s17, 2  ;;  %s1001_s24 = sshll.u32 %s1394_s21, 2 }
  0x2a   : > { %s1738_s22 = scalar_select %p1574_p6, 1, 0 }
  0x2b   : > { %s491_s30 = scalar_lea.hbm %s1699_s0, %s1001_s24  ;;  %s487_s5 = scalar_lea.vmem [#allocation2], %s1000_s23 }
  0x2c   : > { %1739 = sst [smem:[#allocation19_spill]] %s1738_s22  ;;  %s495_s13 = sshll.u32 %s487_s5, 4  ;;  %s496_s13 = int_to_ptr.vmem [resolvable:$true] %s495_s13 }
  0x2d   : > { %s493_s27 = sshll.u32 %s491_s30, 4  ;;  %p1584_p7 = pnand %p1103_p2, %p1557_p11  ;;  %s494_s27 = int_to_ptr.hbm [resolvable:$true] %s493_s27 }
  0x2e   : > { %s484_s20 = scalar_lea.sflag [#allocation3], %s483_s17  ;;  %s1290_s28 = sshra.s32 %s494_s27, 4  ;;  %s1291_s28 = int_to_ptr.hbm [resolvable:$true] %s1290_s28 }
  0x2f   : > { %s1292_s22 = scalar_lea.hbm %s1291_s28, 4  ;;  %p1294_p9 = pneg %p1584_p7 }
  0x30   : > { %p1293_p8 = scmp.ne.s32.totalorder %s1291_s28, %s1292_s22  ;;  %s1297_s24 = scalar_lea.hbm %s1699_s0, 8 }
  0x31   : > { %p1298_p11 = scmp.lt.s32.totalorder %s1291_s28, %s1699_s0  ;;  %p1299_p0 = scmp.lt.s32.totalorder %s1297_s24, %s1292_s22 }
  0x32   : > { %p1295_p10 = pnand %p1294_p9, %p1293_p8 }
  0x33   : > { %p1300_p2 = por %p1299_p0, %p1298_p11 }
  0x34   : > { %p1296_p13 = pneg %p1295_p10 }
  0x36   : > { %p1301_p5 = pnand %p1300_p2, %p1296_p13 }
  0x38   : > { %1304 = shalt.err (!%p1301_p5)
}
  0x39   : > { %1094 = dma.hbm_to_vmem [thread:$0]  (!%p1584_p7), %s494_s27, 64, %s496_s13, %s484_s20  }
  0x3a   : > { %504 = sbr.rel (%p1512_p3) target bundleno = 1113 (0x459), region = 80  ;;  %s1601_s17 = sand.u32 (!%p1512_p3), 1, %s1386_s19  }
  0x3b   : > { %s1003_s16 = sshll.u32 (!%p1512_p3), %s1601_s17, 2  ;;  %s507_s30 = scalar_lea.sflag (!%p1512_p3), [#allocation3], %s1601_s17 }
  0x3c   : > { %s510_s23 = scalar_lea.vmem (!%p1512_p3), [#allocation2], %s1003_s16 }
  0x3f   : > { %1365 = dma.done.wait (%p1563_p12), %s507_s30, 64  }
  0x40   : > { %1367 = vsyncadd (%p1563_p12), %s507_s30, 4294967232 }
  0x41   : > { %1369 = dma.done.wait (%p54_p1), [#allocation6], 512  }
  0x42   : > { %1371 = vsyncadd (%p54_p1), [#allocation6], 4294966784 }
  0x43   : > { %1373 = dma.done.wait (%p54_p1), [#allocation9], 512  }
  0x44   : > { %1375 = vsyncadd (%p54_p1), [#allocation9], 4294966784  ;;  %v1051_v0 = vld [vmem:[#allocation5 + $0x8] sm:$0xff]  ;;  %v1050_v1 = vld [vmem:[#allocation5] sm:$0xff]  ;;  %vm601_vm0 = vcmask 261120   ;;  %v1402_v12 = vmov 32.0  }
  0x45   : > { %611 = vmatpush.bf16.msra.mxu0 %v1051_v0  ;;  %v579_v2 = vld [vmem:[%s510_s23] sm:$0xf]  ;;  %1158 = vrcp.f32 %v1402_v12  ;;  %v1052_v21 = vld [vmem:[#allocation7] sm:$0xff]  ;;  %v1055_v52 = vld [vmem:[#allocation8 + $0x8] sm:$0xff]  ;;  %s1741_s14 = sld [smem:[#allocation24_spill]]  ;;  %s1008_s22 = sshll.u32 %s1601_s17, 3 }
  0x46   : > { %v1148_v3 = vld [vmem:[%s1701_s2] ss:$0 sm:$0xff]  ;;  %v580_v4 = vunpack.c.l.bf16 %v579_v2  ;;  %764 = vmatpush.bf16.msra.mxu2 %v1055_v52  ;;  %v1054_v53 = vld [vmem:[#allocation8] sm:$0xff]  ;;  %s1047_s9 = sshll.u32 %s1507_s25, 3  ;;  %s1742_s15 = sld [smem:[#allocation25_spill]] }
  0x47   : > { %v1053_v19 = vld [vmem:[#allocation7 + $0x8] sm:$0xff]  ;;  %s577_s16 = scalar_lea.vmem [#allocation11], %s1008_s22  ;;  %s870_s25 = scalar_lea.sflag [#allocation4], %s1601_s17 }
  0x48   : > { %691 = vmatpush.bf16.msra.mxu1 %v1053_v19  ;;  %v1149_v33 = vld [vmem:[%s1702_s3] ss:$0 sm:$0xff]  ;;  %s882_s30 = sshll.u32 %s577_s16, 4  ;;  %s883_s30 = int_to_ptr.vmem [resolvable:$true] %s882_s30 }
  0x49   : > { %612 = vmatpush.bf16.msra.mxu0 %v1050_v1  ;;  %v1150_v38 = vld [vmem:[%s1703_s4] ss:$0 sm:$0xff] }
  0x4a   : > { %v1151_v43 = vld [vmem:[%s1705_s6] ss:$0 sm:$0xff]  ;;  %765 = vmatpush.bf16.msra.mxu2 %v1054_v53 }
  0x4b   : > { %v1159_v13 = vpop.eup %1158  ;;  %v1152_v1 = vld [vmem:[%s1706_s7] ss:$0 sm:$0xff] }
  0x4c   : > { %1017 = vmatmul.msk.bf16.vlgmr.msra.gmra.mxu0 %vm601_vm0, %v579_v2  ;;  %v623_v14 = vmul.f32 32.0, %v1159_v13  ;;  %vm627_vm1 = vweird.f32 %v1159_v13  ;;  %692 = vmatpush.bf16.msra.mxu1 %v1052_v21  ;;  %v1057_v19 = vld [vmem:[#allocation10 + $0x8] sm:$0xff]  ;;  %s880_s1 = scalar_lea.hbm %s1742_s15, %s1047_s9  ;;  %s1340_s27 = scalar_lea.hbm %s1742_s15, 16 }
  0x4d   : > { %836 = vmatpush.bf16.msra.mxu3 %v1057_v19  ;;  %s884_s23 = sshll.u32 %s880_s1, 4  ;;  %s885_s23 = int_to_ptr.hbm [resolvable:$true] %s884_s23 }
  0x4e   : > { %v624_v15 = vsub.f32 1.0, %v623_v14  ;;  %s1334_s13 = sshra.s32 %s885_s23, 4  ;;  %s1335_s13 = int_to_ptr.hbm [resolvable:$true] %s1334_s13 }
  0x4f   : > { %s1336_s20 = scalar_lea.hbm %s1335_s13, 8  ;;  %p1341_p12 = scmp.lt.s32.totalorder %s1335_s13, %s1742_s15 }
  0x50   : > { %v625_v16 = vmul.f32 %v1159_v13, %v624_v15  ;;  %p1337_p1 = scmp.ne.s32.totalorder %s1335_s13, %s1336_s20  ;;  %p1342_p7 = scmp.lt.s32.totalorder %s1340_s27, %s1336_s20 }
  0x52   : > { %v626_v17 = vadd.f32 %v1159_v13, %v625_v16  ;;  %p1338_p3 = pnand %p1337_p1, %p1570_p4  ;;  %p1343_p8 = por %p1342_p7, %p1341_p12 }
  0x54   : > { %v1623_v20 = vsel %vm627_vm1, %v1159_v13, %v626_v17  ;;  %p1339_p5 = pneg %p1338_p3 }
  0x56   : > { %p1344_p9 = pnand %p1343_p8, %p1339_p5 }
  0xc9   : > { %v614_v5 = vpop.f32.mrf.mxu0 }
  0xca   : > { %v615_v6 = vadd.f32 %v1148_v3, %v614_v5 }
  0xcc   : > { %v618_v7 = vadd.f32 %v615_v6, %v580_v4  ;;  %v1153_v6 = vld [vmem:[%s1707_s8] ss:$0 sm:$0xff] }
  0xce   : > { %v619_v8 = vsel %vm601_vm0, %v618_v7, 0.0  ;;  %v630_v10 = vmul.f32 %v618_v7, %v618_v7 }
  0xcf   : > { %620 = vadd.xlane.f32.xlu0 %v619_v8 }
  0xd0   : > { %v631_v11 = vsel %vm601_vm0, %v630_v10, 0.0 }
  0xd1   : > { %v616_v9 = vpop.f32.mrf.mxu0 }
  0xd7   : > { %632 = vadd.xlane.f32.xlu0 %v631_v11  ;;  %v1154_v11 = vld [vmem:[%s1709_s10] ss:$0 sm:$0xff] }
 0x142   : > { %v621_v18 = vpop.xlane.xlu0 %620 }
 0x143   : > { %v629_v22 = vmul.f32 %v1623_v20, %v621_v18 }
 0x145   : > { %v635_v24 = vmul.f32 %v629_v22, %v629_v22  ;;  %v648_v36 = vsub.f32 %v618_v7, %v629_v22  ;;  %v1056_v22 = vld [vmem:[#allocation10] sm:$0xff] }
 0x146   : > { %837 = vmatpush.bf16.msra.mxu3 %v1056_v22 }
 0x14a   : > { %v633_v23 = vpop.xlane.xlu0 %632 }
 0x14b   : > { %v634_v25 = vmul.f32 %v633_v23, %v1623_v20 }
 0x14d   : > { %v636_v26 = vsub.f32 %v634_v25, %v635_v24 }
 0x14f   : > { %v637_v27 = vadd.f32 1e-05, %v636_v26 }
 0x151   : > { %1160 = vrsqrt.f32 %v637_v27  ;;  %vm644_vm3 = vweird.f32 %v637_v27 }
 0x157   : > { %v1161_v28 = vpop.eup %1160 }
 0x158   : > { %v639_v29 = vmul.f32 %v1161_v28, %v637_v27  ;;  %vm645_vm2 = vweird.f32 %v1161_v28 }
 0x159   : > { %vm646_vm4 = vmor %vm644_vm3, %vm645_vm2 }
 0x15a   : > { %v640_v30 = vmul.f32 %v1161_v28, %v639_v29 }
 0x15c   : > { %v641_v31 = vmul.f32 0.5, %v640_v30 }
 0x15e   : > { %v642_v32 = vsub.f32 1.5, %v641_v31 }
 0x160   : > { %v643_v34 = vmul.f32 %v1161_v28, %v642_v32 }
 0x162   : > { %v647_v35 = vsel %vm646_vm4, %v1161_v28, %v643_v34  ;;  %v1155_v34 = vld [vmem:[%s1710_s11] ss:$0 sm:$0xff] }
 0x163   : > { %v653_v37 = vmul.f32 %v1149_v33, %v647_v35 }
 0x165   : > { %v654_v39 = vmul.f32 %v653_v37, %v648_v36 }
 0x167   : > { %v659_v40 = vadd.f32 %v1150_v38, %v654_v39 }
 0x169   : > { %v660_v41 = vmax.f32 %v659_v40, 0.0 }
 0x16b   : > { %v661_v42 = vpack.c.bf16 %v660_v41, %v660_v41 }
 0x16d   : > { %1026 = vmatmul.msk.bf16.vlgmr.msra.gmra.mxu1 %vm601_vm0, %v661_v42  ;;  %v1157_v42 = vld [vmem:[%s1741_s14] ss:$0 sm:$0xff] }
 0x1ea   : > { %v694_v44 = vpop.f32.mrf.mxu1 }
 0x1eb   : > { %v695_v45 = vadd.f32 %v1151_v43, %v694_v44 }
 0x1ed   : > { %v698_v46 = vadd.f32 %v695_v45, %v660_v41 }
 0x1ef   : > { %v699_v47 = vsel %vm601_vm0, %v698_v46, 0.0  ;;  %v703_v49 = vmul.f32 %v698_v46, %v698_v46 }
 0x1f0   : > { %700 = vadd.xlane.f32.xlu1 %v699_v47 }
 0x1f1   : > { %v704_v50 = vsel %vm601_vm0, %v703_v49, 0.0  ;;  %v843_v49 = vlaneseq }
 0x1f2   : > { %v696_v48 = vpop.f32.mrf.mxu1 }
 0x1f8   : > { %705 = vadd.xlane.f32.xlu1 %v704_v50 }
 0x263   : > { %v701_v51 = vpop.xlane.xlu1 %700 }
 0x264   : > { %v702_v54 = vmul.f32 %v701_v51, %v1623_v20  ;;  %v844_v51 = vand.u32 127, %v843_v49 }
 0x266   : > { %v708_v56 = vmul.f32 %v702_v54, %v702_v54  ;;  %v721_v4 = vsub.f32 %v698_v46, %v702_v54  ;;  %vm845_vm11 = vcmp.ge.s32.totalorder %v844_v51, 91  ;;  %vm846_vm12 = vcmp.lt.s32.totalorder %v844_v51, 95 }
 0x267   : > { %vm847_vm14 = vmand %vm845_vm11, %vm846_vm12 }
 0x26b   : > { %v706_v55 = vpop.xlane.xlu1 %705 }
 0x26c   : > { %v707_v57 = vmul.f32 %v706_v55, %v1623_v20 }
 0x26e   : > { %v709_v58 = vsub.f32 %v707_v57, %v708_v56 }
 0x270   : > { %v710_v59 = vadd.f32 1e-05, %v709_v58 }
 0x272   : > { %1162 = vrsqrt.f32 %v710_v59  ;;  %vm717_vm6 = vweird.f32 %v710_v59 }
 0x278   : > { %v1163_v60 = vpop.eup %1162 }
 0x279   : > { %v712_v61 = vmul.f32 %v1163_v60, %v710_v59  ;;  %vm718_vm5 = vweird.f32 %v1163_v60 }
 0x27a   : > { %vm719_vm7 = vmor %vm717_vm6, %vm718_vm5 }
 0x27b   : > { %v713_v62 = vmul.f32 %v1163_v60, %v712_v61 }
 0x27d   : > { %v714_v63 = vmul.f32 0.5, %v713_v62 }
 0x27f   : > { %v715_v0 = vsub.f32 1.5, %v714_v63 }
 0x281   : > { %v716_v2 = vmul.f32 %v1163_v60, %v715_v0 }
 0x283   : > { %v720_v3 = vsel %vm719_vm7, %v1163_v60, %v716_v2 }
 0x284   : > { %v726_v5 = vmul.f32 %v1152_v1, %v720_v3 }
 0x286   : > { %v727_v7 = vmul.f32 %v726_v5, %v721_v4 }
 0x288   : > { %v732_v8 = vadd.f32 %v1153_v6, %v727_v7 }
 0x28a   : > { %v733_v9 = vmax.f32 %v732_v8, 0.0 }
 0x28c   : > { %v734_v10 = vpack.c.bf16 %v733_v9, %v733_v9 }
 0x28e   : > { %1035 = vmatmul.msk.bf16.vlgmr.msra.gmra.mxu2 %vm601_vm0, %v734_v10 }
 0x311   : > { %v767_v12 = vpop.f32.mrf.mxu2 }
 0x312   : > { %v768_v13 = vadd.f32 %v1154_v11, %v767_v12 }
 0x314   : > { %v771_v14 = vadd.f32 %v768_v13, %v733_v9 }
 0x316   : > { %v772_v15 = vsel %vm601_vm0, %v771_v14, 0.0  ;;  %v776_v17 = vmul.f32 %v771_v14, %v771_v14 }
 0x317   : > { %773 = vadd.xlane.f32.xlu2 %v772_v15 }
 0x318   : > { %v777_v18 = vsel %vm601_vm0, %v776_v17, 0.0 }
 0x319   : > { %v769_v16 = vpop.f32.mrf.mxu2 }
 0x31f   : > { %778 = vadd.xlane.f32.xlu2 %v777_v18 }
 0x38a   : > { %v774_v21 = vpop.xlane.xlu2 %773 }
 0x38b   : > { %v775_v23 = vmul.f32 %v774_v21, %v1623_v20 }
 0x38d   : > { %v781_v25 = vmul.f32 %v775_v23, %v775_v23  ;;  %v794_v37 = vsub.f32 %v771_v14, %v775_v23 }
 0x392   : > { %v779_v24 = vpop.xlane.xlu2 %778 }
 0x393   : > { %v780_v26 = vmul.f32 %v779_v24, %v1623_v20  ;;  %v1156_v20 = vld [vmem:[%s1711_s12] ss:$0 sm:$0xff] }
 0x395   : > { %v782_v27 = vsub.f32 %v780_v26, %v781_v25 }
 0x397   : > { %v783_v28 = vadd.f32 1e-05, %v782_v27 }
 0x399   : > { %1164 = vrsqrt.f32 %v783_v28  ;;  %vm790_vm9 = vweird.f32 %v783_v28 }
 0x39f   : > { %v1165_v29 = vpop.eup %1164 }
 0x3a0   : > { %v785_v30 = vmul.f32 %v1165_v29, %v783_v28  ;;  %vm791_vm8 = vweird.f32 %v1165_v29 }
 0x3a1   : > { %vm792_vm10 = vmor %vm790_vm9, %vm791_vm8 }
 0x3a2   : > { %v786_v31 = vmul.f32 %v1165_v29, %v785_v30 }
 0x3a4   : > { %v787_v32 = vmul.f32 0.5, %v786_v31 }
 0x3a6   : > { %v788_v33 = vsub.f32 1.5, %v787_v32 }
 0x3a8   : > { %v789_v35 = vmul.f32 %v1165_v29, %v788_v33 }
 0x3aa   : > { %v793_v36 = vsel %vm792_vm10, %v1165_v29, %v789_v35 }
 0x3ab   : > { %v799_v38 = vmul.f32 %v1155_v34, %v793_v36 }
 0x3ad   : > { %v800_v39 = vmul.f32 %v799_v38, %v794_v37 }
 0x3af   : > { %v805_v40 = vadd.f32 %v1156_v20, %v800_v39 }
 0x3b1   : > { %v806_v41 = vpack.c.bf16 %v805_v40, %v805_v40 }
 0x3b3   : > { %1044 = vmatmul.msk.bf16.vlgmr.msra.gmra.mxu3 %vm601_vm0, %v806_v41 }
 0x436   : > { %v839_v43 = vpop.f32.mrf.mxu3 }
 0x437   : > { %v840_v44 = vadd.f32 %v1157_v42, %v839_v43 }
 0x439   : > { %v1045_v45 = vmul.f32 -1.442695, %v840_v44 }
 0x43b   : > { %1166 = vpow2.f32 %v1045_v45 }
 0x43e   : > { %v841_v46 = vpop.f32.mrf.mxu3 }
 0x441   : > { %v1167_v47 = vpop.eup %1166 }
 0x442   : > { %v851_v48 = vadd.f32 1.0, %v1167_v47 }
 0x444   : > { %1168 = vrcp.f32 %v851_v48  ;;  %v863_v54 = vand.u32 2147483648, %v851_v48  ;;  %v861_v56 = vand.u32 2147483647, %v851_v48  ;;  %vm857_vm15 = vweird.f32 %v851_v48 }
 0x446   : > { %v864_v58 = vor.u32 1.1754944e-38, %v863_v54  ;;  %vm862_vm1 = vcmp.eq.f32.partialorder %v861_v56, 8.507059e+37 }
 0x44a   : > { %v1169_v50 = vpop.eup %1168 }
 0x44b   : > { %v853_v52 = vmul.f32 %v1169_v50, %v851_v48  ;;  %vm858_vm13 = vweird.f32 %v1169_v50 }
 0x44c   : > { %vm859_vm0 = vmor %vm857_vm15, %vm858_vm13 }
 0x44d   : > { %v854_v53 = vsub.f32 1.0, %v853_v52 }
 0x44f   : > { %v855_v55 = vmul.f32 %v1169_v50, %v854_v53 }
 0x451   : > { %v856_v57 = vadd.f32 %v1169_v50, %v855_v55 }
 0x453   : > { %v860_v59 = vsel %vm859_vm0, %v1169_v50, %v856_v57 }
 0x454   : > { %v865_v60 = vsel %vm862_vm1, %v864_v58, %v860_v59 }
 0x455   : > { %v867_v61 = vsel %vm847_vm14, %v865_v60, %v840_v44 }
 0x456   : > { %868 = vst [vmem:[%s577_s16] sm:$0xff] %v867_v61 }
 0x457   : > { %1347 = shalt.err (!%p1344_p9)
}
 0x458   : > { %1076 = dma.vmem_to_hbm [thread:$0]  (%p1570_p4), %s883_s30, 128, %s885_s23, %s870_s25  }
 0x459 PF: > { %s896_s9 = sand.u32 1, %s1382_s18   ;;  %p1744_p10 = scmp.ge.s32.totalorder %s1394_s21, 2 }
 0x45a   : > { %s897_s5 = scalar_lea.sflag [#allocation4], %s896_s9 }
 0x45b   : > { %p1096_p13 = pnand %p1744_p10, %p1574_p6 }
 0x45d   : > { %p1097_p11 = pneg %p1096_p13 }
 0x45f   : > { %1377 = dma.done.wait (%p1097_p11), %s897_s5, 128  }
 0x460   : > { %1379 = vsyncadd (%p1097_p11), %s897_s5, 4294967168  ;;  %s1745_s21 = sld [smem:[#allocation17_spill]]  ;;  %s1748_s18 = smov %s1386_s19 }
 0x461   : > { %s1746_s24 = sld [smem:[#allocation16_spill]] }
 0x462   : > { %s1747_s20 = sld [smem:[#allocation18_spill]] }
 0x466   : > { %p30_p0 = scmp.ge.s32.totalorder %s1745_s21, 4  }
 0x467   : > { %s1749_s19 = smov %s1746_s24 }
 0x468   :  { %32 = sbr.rel (!%p30_p0) target bundleno = 14 (0xe), region = 141 }
 0x46d   :  { %903 = vsyncpa [#allocation3], 1 }
 0x46e   :  { %905 = vsyncpa [#allocation3 + $0x1], 1 }
 0x46f   :  { %906 = vsyncpa [#allocation6], 1 }
 0x470   :  { %907 = vsyncpa [#allocation9], 1 }
 0x471   :  { %908 = vsyncpa [#allocation4], 1 }
 0x472   :  { %910 = vsyncpa [#allocation4 + $0x1], 1 }

</bundles_post_ra>
